<compile_context>
chip_gen: v7x
topology: tpu7x:2x2x1
jax: 0.10.0
libtpu: 0.0.40
codegen_flags: <defaults>
</compile_context>

<pallas_src>
import jax
import jax.numpy as jnp
from jax.experimental import pallas as pl
from jax.experimental.pallas import tpu as pltpu


def _round_up(v, m):
    return ((v + m - 1) // m) * m


def _cdiv(a, b):
    return -(-a // b)


def _tpu_generation():
    """Best-effort TPU generation (5, 6, 7, ...) from the device kind string."""
    try:
        kind = jax.devices()[0].device_kind.lower()
    except Exception:
        return 6
    for g in (7, 6, 5, 4, 3, 2):
        if (f"v{g}" in kind) or (f"tpu{g}" in kind) or (f"tpu {g}" in kind):
            return g
    return 6


def _make_decoder_kernel(bf16_final_tanh):
    def kernel(x_ref,
               w1_ref, b1_ref,
               w2_ref, b2_ref,
               w3_ref, b3_ref,
               w4_ref, b4_ref,
               o_ref):
        x = x_ref[...]                                                      # (tm, 16) f32

        z1 = jnp.dot(x, w1_ref[...], preferred_element_type=jnp.float32) + b1_ref[...]
        h1 = jnp.tanh(z1)                                                   # (tm, 16) f32

        # Upsample(x2, nearest) already folded into w2 (column pairs summed on host).
        z2 = jnp.dot(h1, w2_ref[...], preferred_element_type=jnp.float32) + b2_ref[...]
        h2 = jnp.tanh(z2)                                                   # (tm, 64) f32

        # Upsample(x3, nearest) folded into w3; w3/b3 also pre-scaled by 0.5 on the
        # host so sigmoid(z) = 0.5*tanh(0.5 z)+0.5 needs no in-kernel 0.5*z multiply.
        z3 = jnp.dot(h2, w3_ref[...], preferred_element_type=jnp.float32) + b3_ref[...]
        h3 = (0.5 * jnp.tanh(z3) + 0.5).astype(jnp.bfloat16)                # (tm, 256)

        # w4/b4 pre-scaled by 0.5 as well; dominant bf16 MXU matmul (K=256, N=896).
        z4 = jnp.dot(h3, w4_ref[...], preferred_element_type=jnp.float32) + b4_ref[...]
        if bf16_final_tanh:
            # v7x: EUP runs bf16 tanh at ~2x the f32 rate on the widest activation.
            t4 = jnp.tanh(z4.astype(jnp.bfloat16)).astype(jnp.float32)
        else:
            t4 = jnp.tanh(z4)
        o_ref[...] = (0.5 * t4 + 0.5).astype(o_ref.dtype)                   # (tm, 896)

    return kernel


def init_decoder_params(key, input_shape=16, outshape=(28, 28)):
    """Deterministic init matching the nn.Linear shapes of the module."""
    d1, d2, d3 = 16, 64, 256
    d_flat = outshape[0] * outshape[1]
    layer_dims = [(d1, input_shape), (d2, d1 * 2), (d3, d2 * 3), (d_flat, d3)]
    params = []
    for out_f, in_f in layer_dims:
        key, kw, kb = jax.random.split(key, 3)
        bound = 1.0 / float(in_f) ** 0.5
        w = jax.random.uniform(kw, (out_f, in_f), jnp.float32, -bound, bound)
        b = jax.random.uniform(kb, (out_f,), jnp.float32, -bound, bound)
        params.append((w, b))
    return params


def _fold_upsample_into_weight(w, scale):
    # w: (out, in*scale) applied to a nearest-upsampled input (each feature
    # repeated `scale` times consecutively)  ->  (out, in) applied to the raw
    # input, by summing the `scale` columns that multiply the same feature.
    out_f, in_s = w.shape
    return w.reshape(out_f, in_s // scale, scale).sum(axis=-1)


def _choose_row_tile(M, generation):
    """Row tile tm (multiple of 8) and padded row count, generation-aware.

    Single-TC chips (v5e/v6e): one grid step whenever M fits under the cap —
    a forced split would only add ~0.35us/step pipeline overhead.
    2-TC chips (v7x): at least 2 steps and an even step count so
    dimension_semantics=("parallel",) shards evenly across both TensorCores.
    Steps are balanced (tm = ceil(M/steps)) to minimize padded-row waste.
    """
    tm_cap = 1024
    M8 = _round_up(max(M, 1), 8)
    two_tc = generation >= 7

    min_steps = 2 if (two_tc and M8 > 8) else 1
    n_steps = max(min_steps, _cdiv(M8, tm_cap))
    if two_tc and n_steps > 1 and (n_steps % 2):
        n_steps += 1
    tm = _round_up(_cdiv(M8, n_steps), 8)
    M_pad = n_steps * tm
    return tm, M_pad


def decoder_forward(codes, params, out_dtype=jnp.float32):
    *lead, L = codes.shape
    (w1, b1), (w2, b2), (w3, b3), (w4, b4) = params
    assert L == w1.shape[1], "codes have the wrong length for this decoder"

    M = 1
    for d in lead:
        M *= d
    x = codes.reshape(M, L).astype(jnp.float32)

    gen = _tpu_generation()

    # Fold the nearest-neighbour upsamples into the following Linear weights,
    # and fold the 0.5 sigmoid pre-scale into the last two weight/bias pairs.
    w2f = _fold_upsample_into_weight(w2, 2)          # (64, 16)
    w3f = _fold_upsample_into_weight(w3, 3) * 0.5    # (256, 64)
    b3h = b3 * 0.5

    # Pad the output feature dim to a multiple of 128 lanes (784 -> 896) so
    # the store is lane-dense; padded columns are zero-weight and sliced off.
    d_out = w4.shape[0]
    d_out_pad = _round_up(d_out, 128)
    w4p = jnp.pad(w4, ((0, d_out_pad - d_out), (0, 0))) * 0.5
    b4p = jnp.pad(b4, ((0, d_out_pad - d_out),)) * 0.5

    # Kernel computes x @ W^T.  Layers 1-3 stay f32 (tiny MXU work, no pack
    # passes); only the dominant final matmul uses bf16 operands.
    wts = [w1.T.astype(jnp.float32), w2f.T.astype(jnp.float32),
           w3f.T.astype(jnp.float32), w4p.T.astype(jnp.bfloat16)]
    bss = [b1.reshape(1, -1).astype(jnp.float32),
           b2.reshape(1, -1).astype(jnp.float32),
           b3h.reshape(1, -1).astype(jnp.float32),
           b4p.reshape(1, -1).astype(jnp.float32)]

    tm, M_pad = _choose_row_tile(M, gen)
    if M_pad != M:
        x = jnp.pad(x, ((0, M_pad - M), (0, 0)))

    def full_spec(shape):
        # Constant index_map: whole array resident, fetched once across the grid.
        return pl.BlockSpec(shape, lambda i: (0,) * len(shape))

    in_specs = [pl.BlockSpec((tm, L), lambda i: (i, 0))]
    operands = [x]
    for w, b in zip(wts, bss):
        in_specs.append(full_spec(w.shape))
        in_specs.append(full_spec(b.shape))
        operands.extend([w, b])

    # v7x has 64 MiB physical VMEM (stay well under); v5e/v6e have 128 MiB.
    vmem_limit = (48 if gen >= 7 else 64) * 1024 * 1024

    out = pl.pallas_call(
        _make_decoder_kernel(bf16_final_tanh=(gen >= 7)),
        out_shape=jax.ShapeDtypeStruct((M_pad, d_out_pad), out_dtype),
        grid=(M_pad // tm,),
        in_specs=in_specs,
        out_specs=pl.BlockSpec((tm, d_out_pad), lambda i: (i, 0)),
        compiler_params=pltpu.CompilerParams(
            dimension_semantics=("parallel",),
            vmem_limit_bytes=vmem_limit),
    )(*operands)

    return out[:M, :d_out].reshape(*lead, d_out)


def decoder_reference(codes, params):
    """Pure-JAX f32 reference (explicit nearest upsample) for validation."""
    (w1, b1), (w2, b2), (w3, b3), (w4, b4) = params
    h = jnp.tanh(codes @ w1.T + b1)
    h = jnp.repeat(h, 2, axis=-1)          # Upsample(scale=2, nearest)
    h = jnp.tanh(h @ w2.T + b2)
    h = jnp.repeat(h, 3, axis=-1)          # Upsample(scale=3, nearest)
    h = jax.nn.sigmoid(h @ w3.T + b3)
    return jax.nn.sigmoid(h @ w4.T + b4)


if __name__ == "__main__":
    key = jax.random.PRNGKey(0)
    k_params, k_codes, k_codes2 = jax.random.split(key, 3)

    params = init_decoder_params(k_params, input_shape=16, outshape=(28, 28))

    # codes: (batch=2, channels=4, code_len=16) — 3-D so nn.Upsample(nearest)
    # acts on the last axis, matching the PyTorch module's usage.
    codes = jax.random.normal(k_codes, (2, 4, 16), dtype=jnp.float32)
    out = jax.block_until_ready(decoder_forward(codes, params))
    ref = decoder_reference(codes, params)
    assert out.shape == (2, 4, 784), out.shape
    # bf16 h3 / w4 on the MXU (and bf16 EUP tanh on v7x) vs f32 reference.
    assert jnp.allclose(out, ref, rtol=0.0, atol=2e-2), (
        float(jnp.max(jnp.abs(out - ref))))

    # Second shape exercising row padding (M=21 -> padded tile rows).
    codes2 = jax.random.normal(k_codes2, (3, 7, 16), dtype=jnp.float32)
    out2 = jax.block_until_ready(decoder_forward(codes2, params))
    ref2 = decoder_reference(codes2, params)
    assert out2.shape == (3, 7, 784), out2.shape
    assert jnp.allclose(out2, ref2, rtol=0.0, atol=2e-2), (
        float(jnp.max(jnp.abs(out2 - ref2))))

    print("KERNEL_OK")
</pallas_src>

<mosaic_0001>
module attributes {stable_mosaic.version = 11 : i64} {
  func.func @kernel(%arg0: i32, %arg1: memref<8x16xf32, #tpu.memory_space<vmem>>, %arg2: memref<16x16xf32, #tpu.memory_space<vmem>>, %arg3: memref<1x16xf32, #tpu.memory_space<vmem>>, %arg4: memref<16x64xf32, #tpu.memory_space<vmem>>, %arg5: memref<1x64xf32, #tpu.memory_space<vmem>>, %arg6: memref<64x256xf32, #tpu.memory_space<vmem>>, %arg7: memref<1x256xf32, #tpu.memory_space<vmem>>, %arg8: memref<256x896xbf16, #tpu.memory_space<vmem>>, %arg9: memref<1x896xf32, #tpu.memory_space<vmem>>, %arg10: memref<8x896xf32, #tpu.memory_space<vmem>>) attributes {dimension_semantics = [#tpu.dimension_semantics<parallel>], iteration_bounds = array<i64: 1>, scalar_prefetch = 0 : i64, scratch_operands = 0 : i64, tpu.core_type = #tpu.core_type<tc>, window_params = [{transform_indices = @transform_0, window_bounds = array<i64: 8, 16>}, {pipeline_mode = #tpu.pipeline_mode<synchronous>, transform_indices = @transform_1, window_bounds = array<i64: 16, 16>}, {pipeline_mode = #tpu.pipeline_mode<synchronous>, transform_indices = @transform_2, window_bounds = array<i64: 1, 16>}, {pipeline_mode = #tpu.pipeline_mode<synchronous>, transform_indices = @transform_3, window_bounds = array<i64: 16, 64>}, {pipeline_mode = #tpu.pipeline_mode<synchronous>, transform_indices = @transform_4, window_bounds = array<i64: 1, 64>}, {pipeline_mode = #tpu.pipeline_mode<synchronous>, transform_indices = @transform_5, window_bounds = array<i64: 64, 256>}, {pipeline_mode = #tpu.pipeline_mode<synchronous>, transform_indices = @transform_6, window_bounds = array<i64: 1, 256>}, {pipeline_mode = #tpu.pipeline_mode<synchronous>, transform_indices = @transform_7, window_bounds = array<i64: 256, 896>}, {pipeline_mode = #tpu.pipeline_mode<synchronous>, transform_indices = @transform_8, window_bounds = array<i64: 1, 896>}, {transform_indices = @transform_9, window_bounds = array<i64: 8, 896>}]} {
    %c0 = arith.constant 0 : index
    %c0_0 = arith.constant 0 : index
    %0 = vector.load %arg1[%c0, %c0_0] : memref<8x16xf32, #tpu.memory_space<vmem>>, vector<8x16xf32>
    %c0_1 = arith.constant 0 : index
    %c0_2 = arith.constant 0 : index
    %1 = vector.load %arg2[%c0_1, %c0_2] : memref<16x16xf32, #tpu.memory_space<vmem>>, vector<16x16xf32>
    %cst = arith.constant dense<0.000000e+00> : vector<8x16xf32>
    %2 = tpu.matmul %0, %1, %cst {dimension_numbers = #tpu.dot_dimension_numbers<[1], [0], [0], [1], [0, 0, 1, 1], [], []>} : vector<8x16xf32>, vector<16x16xf32>, vector<8x16xf32> -> vector<8x16xf32>
    %c0_3 = arith.constant 0 : index
    %c0_4 = arith.constant 0 : index
    %3 = vector.load %arg3[%c0_3, %c0_4] : memref<1x16xf32, #tpu.memory_space<vmem>>, vector<1x16xf32>
    %4 = vector.broadcast %3 : vector<1x16xf32> to vector<8x16xf32>
    %5 = arith.addf %2, %4 : vector<8x16xf32>
    %6 = math.tanh %5 : vector<8x16xf32>
    %c0_5 = arith.constant 0 : index
    %c0_6 = arith.constant 0 : index
    %7 = vector.load %arg4[%c0_5, %c0_6] : memref<16x64xf32, #tpu.memory_space<vmem>>, vector<16x64xf32>
    %cst_7 = arith.constant dense<0.000000e+00> : vector<8x64xf32>
    %8 = tpu.matmul %6, %7, %cst_7 {dimension_numbers = #tpu.dot_dimension_numbers<[1], [0], [0], [1], [0, 0, 1, 1], [], []>} : vector<8x16xf32>, vector<16x64xf32>, vector<8x64xf32> -> vector<8x64xf32>
    %c0_8 = arith.constant 0 : index
    %c0_9 = arith.constant 0 : index
    %9 = vector.load %arg5[%c0_8, %c0_9] : memref<1x64xf32, #tpu.memory_space<vmem>>, vector<1x64xf32>
    %10 = vector.broadcast %9 : vector<1x64xf32> to vector<8x64xf32>
    %11 = arith.addf %8, %10 : vector<8x64xf32>
    %12 = math.tanh %11 : vector<8x64xf32>
    %c0_10 = arith.constant 0 : index
    %c0_11 = arith.constant 0 : index
    %13 = vector.load %arg6[%c0_10, %c0_11] : memref<64x256xf32, #tpu.memory_space<vmem>>, vector<64x256xf32>
    %cst_12 = arith.constant dense<0.000000e+00> : vector<8x256xf32>
    %14 = tpu.matmul %12, %13, %cst_12 {dimension_numbers = #tpu.dot_dimension_numbers<[1], [0], [0], [1], [0, 0, 1, 1], [], []>} : vector<8x64xf32>, vector<64x256xf32>, vector<8x256xf32> -> vector<8x256xf32>
    %c0_13 = arith.constant 0 : index
    %c0_14 = arith.constant 0 : index
    %15 = vector.load %arg7[%c0_13, %c0_14] : memref<1x256xf32, #tpu.memory_space<vmem>>, vector<1x256xf32>
    %16 = vector.broadcast %15 : vector<1x256xf32> to vector<8x256xf32>
    %17 = arith.addf %14, %16 : vector<8x256xf32>
    %18 = math.tanh %17 : vector<8x256xf32>
    %cst_15 = arith.constant 5.000000e-01 : f32
    %19 = vector.broadcast %cst_15 : f32 to vector<8x256xf32>
    %20 = arith.mulf %19, %18 : vector<8x256xf32>
    %cst_16 = arith.constant 5.000000e-01 : f32
    %21 = vector.broadcast %cst_16 : f32 to vector<8x256xf32>
    %22 = arith.addf %20, %21 : vector<8x256xf32>
    %23 = arith.truncf %22 : vector<8x256xf32> to vector<8x256xbf16>
    %c0_17 = arith.constant 0 : index
    %c0_18 = arith.constant 0 : index
    %24 = vector.load %arg8[%c0_17, %c0_18] : memref<256x896xbf16, #tpu.memory_space<vmem>>, vector<256x896xbf16>
    %cst_19 = arith.constant dense<0.000000e+00> : vector<8x896xf32>
    %25 = tpu.matmul %23, %24, %cst_19 {dimension_numbers = #tpu.dot_dimension_numbers<[1], [0], [0], [1], [0, 0, 1, 1], [], []>} : vector<8x256xbf16>, vector<256x896xbf16>, vector<8x896xf32> -> vector<8x896xf32>
    %c0_20 = arith.constant 0 : index
    %c0_21 = arith.constant 0 : index
    %26 = vector.load %arg9[%c0_20, %c0_21] : memref<1x896xf32, #tpu.memory_space<vmem>>, vector<1x896xf32>
    %27 = vector.broadcast %26 : vector<1x896xf32> to vector<8x896xf32>
    %28 = arith.addf %25, %27 : vector<8x896xf32>
    %29 = math.tanh %28 : vector<8x896xf32>
    %cst_22 = arith.constant 5.000000e-01 : f32
    %30 = vector.broadcast %cst_22 : f32 to vector<8x896xf32>
    %31 = arith.mulf %30, %29 : vector<8x896xf32>
    %cst_23 = arith.constant 5.000000e-01 : f32
    %32 = vector.broadcast %cst_23 : f32 to vector<8x896xf32>
    %33 = arith.addf %31, %32 : vector<8x896xf32>
    %c0_24 = arith.constant 0 : index
    %c0_25 = arith.constant 0 : index
    %34 = vector.load %arg10[%c0_24, %c0_25] : memref<8x896xf32, #tpu.memory_space<vmem>>, vector<8x896xf32>
    tpu.vector_store %arg10[%c0_24, %c0_25], %33 {strides = array<i32>} : memref<8x896xf32, #tpu.memory_space<vmem>>, vector<8x896xf32>,
    return
  }
  func.func @transform_0(%arg0: i32) -> (i32, i32) {
    %c0_i32 = arith.constant 0 : i32
    %c0_i32_0 = arith.constant 0 : i32
    return %arg0, %c0_i32 : i32, i32
  }
  func.func @transform_1(%arg0: i32) -> (i32, i32) {
    %c0_i32 = arith.constant 0 : i32
    %c0_i32_0 = arith.constant 0 : i32
    %c0_i32_1 = arith.constant 0 : i32
    return %c0_i32, %c0_i32_0 : i32, i32
  }
  func.func @transform_2(%arg0: i32) -> (i32, i32) {
    %c0_i32 = arith.constant 0 : i32
    %c0_i32_0 = arith.constant 0 : i32
    %c0_i32_1 = arith.constant 0 : i32
    return %c0_i32, %c0_i32_0 : i32, i32
  }
  func.func @transform_3(%arg0: i32) -> (i32, i32) {
    %c0_i32 = arith.constant 0 : i32
    %c0_i32_0 = arith.constant 0 : i32
    %c0_i32_1 = arith.constant 0 : i32
    return %c0_i32, %c0_i32_0 : i32, i32
  }
  func.func @transform_4(%arg0: i32) -> (i32, i32) {
    %c0_i32 = arith.constant 0 : i32
    %c0_i32_0 = arith.constant 0 : i32
    %c0_i32_1 = arith.constant 0 : i32
    return %c0_i32, %c0_i32_0 : i32, i32
  }
  func.func @transform_5(%arg0: i32) -> (i32, i32) {
    %c0_i32 = arith.constant 0 : i32
    %c0_i32_0 = arith.constant 0 : i32
    %c0_i32_1 = arith.constant 0 : i32
    return %c0_i32, %c0_i32_0 : i32, i32
  }
  func.func @transform_6(%arg0: i32) -> (i32, i32) {
    %c0_i32 = arith.constant 0 : i32
    %c0_i32_0 = arith.constant 0 : i32
    %c0_i32_1 = arith.constant 0 : i32
    return %c0_i32, %c0_i32_0 : i32, i32
  }
  func.func @transform_7(%arg0: i32) -> (i32, i32) {
    %c0_i32 = arith.constant 0 : i32
    %c0_i32_0 = arith.constant 0 : i32
    %c0_i32_1 = arith.constant 0 : i32
    return %c0_i32, %c0_i32_0 : i32, i32
  }
  func.func @transform_8(%arg0: i32) -> (i32, i32) {
    %c0_i32 = arith.constant 0 : i32
    %c0_i32_0 = arith.constant 0 : i32
    %c0_i32_1 = arith.constant 0 : i32
    return %c0_i32, %c0_i32_0 : i32, i32
  }
  func.func @transform_9(%arg0: i32) -> (i32, i32) {
    %c0_i32 = arith.constant 0 : i32
    %c0_i32_0 = arith.constant 0 : i32
    return %arg0, %c0_i32 : i32, i32
  }
}

</mosaic_0001>

<bundles_post_ra>
// kernel: tpu_custom_call.1
= control target key start
LH: loop header
LB: loop body
LE: loop exit
PB: predicated region body
PF: predicated region fallthrough
CT: control target
= control target key end

     0   :  { %14 = vsyncpa [#allocation3], 0  ;;  %s2204_s0 = inlined_call_operand.hbm [shape: f32[8,16], index: 0, kind: input, shape index: {}]   ;;  %s2205_s1 = inlined_call_operand.hbm [shape: f32[16,16], index: 1, kind: input, shape index: {}]   ;;  %s2206_s2 = inlined_call_operand.hbm [shape: f32[1,16], index: 2, kind: input, shape index: {}]   ;;  %s2207_s3 = inlined_call_operand.hbm [shape: f32[16,64], index: 3, kind: input, shape index: {}]   ;;  %s2208_s4 = inlined_call_operand.hbm [shape: f32[1,64], index: 4, kind: input, shape index: {}]   ;;  %s2209_s5 = inlined_call_operand.hbm [shape: f32[64,256], index: 5, kind: input, shape index: {}]   ;;  %s2210_s6 = inlined_call_operand.hbm [shape: f32[1,256], index: 6, kind: input, shape index: {}]   ;;  %s2211_s7 = inlined_call_operand.hbm [shape: bf16[256,896], index: 7, kind: input, shape index: {}]   ;;  %s2212_s8 = inlined_call_operand.hbm [shape: f32[1,896], index: 8, kind: input, shape index: {}]   ;;  %s2213_s9 = inlined_call_operand.hbm [shape: f32[8,896], index: 9, kind: output, shape index: {}]  }
   0x1   :  { %15 = vsyncpa [#allocation6], 0 }
   0x2   :  { %16 = vsyncpa [#allocation9], 0 }
   0x3   :  { %17 = vsyncpa [#allocation12], 0 }
   0x4   :  { %18 = vsyncpa [#allocation15], 0 }
   0x5   :  { %19 = vsyncpa [#allocation4], 0  ;;  %s1990_s30 = smov [#allocation5]   ;;  %s1758_s13 = scalar_lea.hbm %s2205_s1, 256 }
   0x6   :  { %s35_s10 = sshll.u32 %s1990_s30, 4  ;;  %p1759_p0 = scmp.ne.s32.totalorder %s2205_s1, %s1758_s13  ;;  %s36_s10 = int_to_ptr.vmem [resolvable:$true] %s35_s10 }
   0x7   :  { %p1762_p1 = scmp.lt.u32.totalorder %s1758_s13, %s2205_s1 }
   0x9   :  { %p1764_p2 = pnand %p1762_p1, %p1759_p0 }
   0xb   :  { %1767 = shalt.err (!%p1764_p2)
}
   0xc   :  { %s1768_s18 = scalar_lea.vmem %s36_s10, 256  ;;  %p1773_p4 = scmp.lt.s32.totalorder %s36_s10, %s36_s10 }
   0xd   :  { %p1769_p3 = scmp.ne.s32.totalorder %s36_s10, %s1768_s18  ;;  %p1774_p5 = scmp.lt.s32.totalorder %s1768_s18, %s1768_s18 }
   0xf   :  { %p1775_p6 = por %p1774_p5, %p1773_p4 }
  0x11   :  { %p1776_p7 = pnand %p1775_p6, %p1769_p3 }
  0x13   :  { %1779 = shalt.err (!%p1776_p7)
}
  0x14   :  { %s1991_s19 = smov 128   ;;  %s1992_s20 = smov 8  }
  0x15   :  { %41 = dma.hbm_to_vmem [thread:$0]  %s2205_s1, 256, %s36_s10, [#allocation6], %s1991_s19, %s1991_s19, %s1992_s20  }
  0x16   :  { %s1993_s23 = smov [#allocation8]   ;;  %s1994_s25 = smov [#allocation11]  }
  0x17   :  { %s57_s24 = sshll.u32 %s1993_s23, 4  ;;  %s79_s26 = sshll.u32 %s1994_s25, 4  ;;  %s58_s24 = int_to_ptr.vmem [resolvable:$true] %s57_s24  ;;  %s80_s26 = int_to_ptr.vmem [resolvable:$true] %s79_s26 }
  0x18   :  { %s1780_s29 = scalar_lea.hbm %s2207_s3, 256 }
  0x19   :  { %p1781_p8 = scmp.ne.s32.totalorder %s2207_s3, %s1780_s29  ;;  %p1784_p9 = scmp.lt.u32.totalorder %s1780_s29, %s2207_s3 }
  0x1b   :  { %p1786_p10 = pnand %p1784_p9, %p1781_p8 }
  0x1d   :  { %1789 = shalt.err (!%p1786_p10)
}
  0x1e   :  { %s1790_s1 = scalar_lea.vmem %s58_s24, 256  ;;  %p1795_p12 = scmp.lt.s32.totalorder %s58_s24, %s58_s24 }
  0x1f   :  { %p1791_p11 = scmp.ne.s32.totalorder %s58_s24, %s1790_s1  ;;  %p1796_p13 = scmp.lt.s32.totalorder %s1790_s1, %s1790_s1 }
  0x21   :  { %p1797_p0 = por %p1796_p13, %p1795_p12 }
  0x23   :  { %p1798_p1 = pnand %p1797_p0, %p1791_p11 }
  0x25   :  { %1801 = shalt.err (!%p1798_p1)
}
  0x26   :  { %63 = dma.hbm_to_vmem [thread:$0]  %s2207_s3, 256, %s58_s24, [#allocation9], %s1991_s19, %s1991_s19, %s1992_s20  }
  0x27   :  { %s1802_s17 = scalar_lea.hbm %s2209_s5, 2048 }
  0x28   :  { %p1803_p2 = scmp.ne.s32.totalorder %s2209_s5, %s1802_s17  ;;  %p1806_p3 = scmp.lt.u32.totalorder %s1802_s17, %s2209_s5 }
  0x2a   :  { %p1808_p4 = pnand %p1806_p3, %p1803_p2 }
  0x2c   :  { %1811 = shalt.err (!%p1808_p4)
}
  0x2d   :  { %s1812_s25 = scalar_lea.vmem %s80_s26, 2048  ;;  %p1817_p6 = scmp.lt.s32.totalorder %s80_s26, %s80_s26 }
  0x2e   :  { %p1813_p5 = scmp.ne.s32.totalorder %s80_s26, %s1812_s25  ;;  %p1818_p7 = scmp.lt.s32.totalorder %s1812_s25, %s1812_s25 }
  0x30   :  { %p1819_p8 = por %p1818_p7, %p1817_p6 }
  0x32   :  { %p1820_p9 = pnand %p1819_p8, %p1813_p5 }
  0x34   :  { %1823 = shalt.err (!%p1820_p9)
}
  0x35   :  { %s1995_s3 = smov 256   ;;  %s1996_s19 = smov 16  }
  0x36   :  { %85 = dma.hbm_to_vmem [thread:$0]  %s2209_s5, 2048, %s80_s26, [#allocation12], %s1995_s3, %s1995_s3, %s1996_s19  }
  0x37   :  { %s1997_s27 = smov [#allocation14]   ;;  %s1824_s11 = scalar_lea.hbm %s2211_s7, 14336 }
  0x38   :  { %s101_s28 = sshll.u32 %s1997_s27, 4  ;;  %p1825_p10 = scmp.ne.s32.totalorder %s2211_s7, %s1824_s11  ;;  %s102_s28 = int_to_ptr.vmem [resolvable:$true] %s101_s28 }
  0x39   :  { %p1828_p11 = scmp.lt.u32.totalorder %s1824_s11, %s2211_s7 }
  0x3b   :  { %p1830_p12 = pnand %p1828_p11, %p1825_p10 }
  0x3d   :  { %1833 = shalt.err (!%p1830_p12)
}
  0x3e   :  { %s1834_s14 = scalar_lea.vmem %s102_s28, 14336  ;;  %p1839_p0 = scmp.lt.s32.totalorder %s102_s28, %s102_s28 }
  0x3f   :  { %p1835_p13 = scmp.ne.s32.totalorder %s102_s28, %s1834_s14  ;;  %p1840_p1 = scmp.lt.s32.totalorder %s1834_s14, %s1834_s14 }
  0x41   :  { %p1841_p2 = por %p1840_p1, %p1839_p0 }
  0x43   :  { %p1842_p3 = pnand %p1841_p2, %p1835_p13 }
  0x45   :  { %1845 = shalt.err (!%p1842_p3)
}
  0x46   :  { %s1998_s5 = smov 448   ;;  %s1999_s26 = smov 28  }
  0x47   :  { %107 = dma.hbm_to_vmem [thread:$0]  %s2211_s7, 14336, %s102_s28, [#allocation15], %s1998_s5, %s1998_s5, %s1999_s26  }
  0x48   :  { %s2000_s17 = smov [#allocation2]   ;;  %s2001_s21 = smov [#allocation7]  }
  0x49   :  { %s26_s18 = sshll.u32 %s2000_s17, 4  ;;  %s48_s22 = sshll.u32 %s2001_s21, 4  ;;  %s27_s18 = int_to_ptr.vmem [resolvable:$true] %s26_s18  ;;  %s49_s22 = int_to_ptr.vmem [resolvable:$true] %s48_s22 }
  0x4a   :  { %s1846_s3 = scalar_lea.hbm %s2204_s0, 128 }
  0x4b   :  { %p1847_p4 = scmp.ne.s32.totalorder %s2204_s0, %s1846_s3  ;;  %p1850_p5 = scmp.lt.u32.totalorder %s1846_s3, %s2204_s0 }
  0x4d   :  { %p1852_p6 = pnand %p1850_p5, %p1847_p4 }
  0x4f   :  { %1855 = shalt.err (!%p1852_p6)
}
  0x50   :  { %s1856_s7 = scalar_lea.vmem %s27_s18, 128  ;;  %p1861_p8 = scmp.lt.s32.totalorder %s27_s18, %s27_s18 }
  0x51   :  { %p1857_p7 = scmp.ne.s32.totalorder %s27_s18, %s1856_s7  ;;  %p1862_p9 = scmp.lt.s32.totalorder %s1856_s7, %s1856_s7 }
  0x53   :  { %p1863_p10 = por %p1862_p9, %p1861_p8 }
  0x55   :  { %p1864_p11 = pnand %p1863_p10, %p1857_p7 }
  0x57   :  { %1867 = shalt.err (!%p1864_p11)
}
  0x58   :  { %29 = dma.hbm_to_vmem [thread:$0]  %s2204_s0, 128, %s27_s18, [#allocation3]  }
  0x59   :  { %s1868_s12 = scalar_lea.hbm %s2206_s2, 16 }
  0x5a   :  { %p1869_p12 = scmp.ne.s32.totalorder %s2206_s2, %s1868_s12  ;;  %p1872_p13 = scmp.lt.u32.totalorder %s1868_s12, %s2206_s2 }
  0x5c   :  { %p1874_p0 = pnand %p1872_p13, %p1869_p12 }
  0x5e   :  { %1877 = shalt.err (!%p1874_p0)
}
  0x5f   :  { %s1878_s5 = scalar_lea.vmem %s49_s22, 16  ;;  %s1882_s26 = scalar_lea.vmem %s49_s22, 32 }
  0x60   :  { %p1879_p1 = scmp.ne.s32.totalorder %s49_s22, %s1878_s5  ;;  %p1883_p2 = scmp.lt.s32.totalorder %s49_s22, %s49_s22 }
  0x61   :  { %p1884_p3 = scmp.lt.s32.totalorder %s1882_s26, %s1878_s5 }
  0x63   :  { %p1885_p4 = por %p1884_p3, %p1883_p2 }
  0x65   :  { %p1886_p5 = pnand %p1885_p4, %p1879_p1 }
  0x67   :  { %1889 = shalt.err (!%p1886_p5)
}
  0x68   :  { %51 = dma.hbm_to_vmem [thread:$0]  %s2206_s2, 16, %s49_s22, [#allocation6]  }
  0x69   :  { %s2002_s16 = smov [#allocation10]   ;;  %s2003_s18 = smov [#allocation13]  }
  0x6a   :  { %s70_s17 = sshll.u32 %s2002_s16, 4  ;;  %s92_s21 = sshll.u32 %s2003_s18, 4  ;;  %s71_s17 = int_to_ptr.vmem [resolvable:$true] %s70_s17  ;;  %s93_s21 = int_to_ptr.vmem [resolvable:$true] %s92_s21 }
  0x6b   :  { %s1890_s3 = scalar_lea.hbm %s2208_s4, 16 }
  0x6c   :  { %p1891_p6 = scmp.ne.s32.totalorder %s2208_s4, %s1890_s3  ;;  %p1894_p7 = scmp.lt.u32.totalorder %s1890_s3, %s2208_s4 }
  0x6e   :  { %p1896_p8 = pnand %p1894_p7, %p1891_p6 }
  0x70   :  { %1899 = shalt.err (!%p1896_p8)
}
  0x71   :  { %s1900_s2 = scalar_lea.vmem %s71_s17, 16  ;;  %s1904_s22 = scalar_lea.vmem %s71_s17, 32 }
  0x72   :  { %p1901_p9 = scmp.ne.s32.totalorder %s71_s17, %s1900_s2  ;;  %p1905_p10 = scmp.lt.s32.totalorder %s71_s17, %s71_s17 }
  0x73   :  { %p1906_p11 = scmp.lt.s32.totalorder %s1904_s22, %s1900_s2 }
  0x75   :  { %p1907_p12 = por %p1906_p11, %p1905_p10 }
  0x77   :  { %p1908_p13 = pnand %p1907_p12, %p1901_p9 }
  0x79   :  { %1911 = shalt.err (!%p1908_p13)
}
  0x7a   :  { %73 = dma.hbm_to_vmem [thread:$0]  %s2208_s4, 16, %s71_s17, [#allocation9]  }
  0x7b   :  { %s1912_s11 = scalar_lea.hbm %s2210_s6, 32 }
  0x7c   :  { %p1913_p0 = scmp.ne.s32.totalorder %s2210_s6, %s1912_s11  ;;  %p1916_p1 = scmp.lt.u32.totalorder %s1912_s11, %s2210_s6 }
  0x7e   :  { %p1918_p2 = pnand %p1916_p1, %p1913_p0 }
  0x80   :  { %1921 = shalt.err (!%p1918_p2)
}
  0x81   :  { %s1922_s14 = scalar_lea.vmem %s93_s21, 32  ;;  %p1927_p4 = scmp.lt.s32.totalorder %s93_s21, %s93_s21 }
  0x82   :  { %p1923_p3 = scmp.ne.s32.totalorder %s93_s21, %s1922_s14  ;;  %p1928_p5 = scmp.lt.s32.totalorder %s1922_s14, %s1922_s14 }
  0x84   :  { %p1929_p6 = por %p1928_p5, %p1927_p4 }
  0x86   :  { %p1930_p7 = pnand %p1929_p6, %p1923_p3 }
  0x88   :  { %1933 = shalt.err (!%p1930_p7)
}
  0x89   :  { %95 = dma.hbm_to_vmem [thread:$0]  %s2210_s6, 32, %s93_s21, [#allocation12]  }
  0x8a   :  { %s2004_s26 = smov [#allocation16]   ;;  %s1934_s17 = scalar_lea.hbm %s2212_s8, 112 }
  0x8b   :  { %s114_s0 = sshll.u32 %s2004_s26, 4  ;;  %p1935_p8 = scmp.ne.s32.totalorder %s2212_s8, %s1934_s17  ;;  %s115_s0 = int_to_ptr.vmem [resolvable:$true] %s114_s0 }
  0x8c   :  { %p1938_p9 = scmp.lt.u32.totalorder %s1934_s17, %s2212_s8 }
  0x8e   :  { %p1940_p10 = pnand %p1938_p9, %p1935_p8 }
  0x90   :  { %1943 = shalt.err (!%p1940_p10)
}
  0x91   :  { %s1944_s19 = scalar_lea.vmem %s115_s0, 112  ;;  %s1948_s6 = scalar_lea.vmem %s115_s0, 128 }
  0x92   :  { %p1945_p11 = scmp.ne.s32.totalorder %s115_s0, %s1944_s19  ;;  %p1949_p12 = scmp.lt.s32.totalorder %s115_s0, %s115_s0 }
  0x93   :  { %p1950_p13 = scmp.lt.s32.totalorder %s1948_s6, %s1944_s19 }
  0x95   :  { %p1951_p0 = por %p1950_p13, %p1949_p12 }
  0x97   :  { %p1952_p1 = pnand %p1951_p0, %p1945_p11 }
  0x99   :  { %1955 = shalt.err (!%p1952_p1)
}
  0x9a   :  { %117 = dma.hbm_to_vmem [thread:$0]  %s2212_s8, 112, %s115_s0, [#allocation15]  }
  0x9b   :  { %1978 = dma.done.wait [#allocation3], 128  }
  0x9c   :  { %1979 = vsyncadd [#allocation3], 4294967168 }
  0x9d   :  { %1980 = dma.done.wait [#allocation6], 272  }
  0x9e   :  { %1981 = vsyncadd [#allocation6], 4294967024 }
  0x9f   :  { %1982 = dma.done.wait [#allocation9], 272  }
  0xa0   :  { %1983 = vsyncadd [#allocation9], 4294967024 }
  0xa1   :  { %1984 = dma.done.wait [#allocation12], 2080  }
  0xa2   :  { %1985 = vsyncadd [#allocation12], 4294965216 }
  0xa3   :  { %1986 = dma.done.wait [#allocation15], 14448  }
  0xa4   :  { %1987 = vsyncadd [#allocation15], 4294952848  ;;  %v2005_v0 = vmov 0.0|0.0   ;;  %vm2006_vm0 = vmmov 0   ;;  %v2007_v1 = vmov 0.0   ;;  %v147_v2 = vld [vmem:[#allocation5] sm:$0xff] }
  0xa5   :  { %1535 = vmatprep.subr.bf16.mxu0 %v2005_v0  ;;  %1525 = vmatprep.mubr.msk.f32.mxu0 %vm2006_vm0, %v2007_v1  ;;  %v148_v3 = vld [vmem:[#allocation5 + $0x8] sm:$0xff]  ;;  %v146_v5 = vld [vmem:[#allocation2] sm:$0xff]  ;;  %vm156_vm1 = vcmask 130048   ;;  %v1376_v12 = vld [vmem:[#allocation7] ss:$0 sm:$0xff]  ;;  %vm342_vm2 = vcmask 523264  }
  0xa6   :  { %v1536_v4 = vpack.c.bf16 %v148_v3, %v147_v2  ;;  %v231_v6 = vld [vmem:[#allocation8] sm:$0xff]  ;;  %v232_v7 = vld [vmem:[#allocation8 + $0x8] sm:$0xff]  ;;  %v314_v16 = vld [vmem:[#allocation11] sm:$0xff]  ;;  %s2008_s8 = smov [#allocation17]  }
  0xa7   :  { %v1539_v8 = vpack.c.bf16 %v232_v7, %v231_v6  ;;  %v315_v9 = vld [vmem:[#allocation11 + $0x8] sm:$0xff]  ;;  %v317_v10 = vld [vmem:[#allocation11 + $0x18] sm:$0xff]  ;;  %v316_v17 = vld [vmem:[#allocation11 + $0x10] sm:$0xff]  ;;  %s1363_s24 = sshll.u32 %s2008_s8, 4  ;;  %s1364_s24 = int_to_ptr.vmem [resolvable:$true] %s1363_s24 }
  0xa8   :  { %1537 = vmatpush3.bf16.msra.mxu0 %v1536_v4  ;;  %v1541_v11 = vpack.c.bf16 %v317_v10, %v315_v9  ;;  %v1543_v18 = vpack.c.bf16 %v316_v17, %v314_v16  ;;  %v319_v20 = vld [vmem:[#allocation11 + $0x28] sm:$0xff]  ;;  %v321_v21 = vld [vmem:[#allocation11 + $0x38] sm:$0xff]  ;;  %v318_v23 = vld [vmem:[#allocation11 + $0x20] sm:$0xff]  ;;  %s1956_s27 = scalar_lea.vmem %s1364_s24, 896  ;;  %p1961_p3 = scmp.lt.s32.totalorder %s1364_s24, %s1364_s24 }
  0xa9   :  { %1538 = vmatprep.subr.bf16.mxu0 %v2005_v0  ;;  %v1545_v22 = vpack.c.bf16 %v321_v21, %v319_v20  ;;  %v320_v24 = vld [vmem:[#allocation11 + $0x30] sm:$0xff]  ;;  %v323_v26 = vld [vmem:[#allocation11 + $0x48] sm:$0xff]  ;;  %v325_v27 = vld [vmem:[#allocation11 + $0x58] sm:$0xff]  ;;  %p1957_p2 = scmp.ne.s32.totalorder %s1364_s24, %s1956_s27  ;;  %p1962_p4 = scmp.lt.s32.totalorder %s1956_s27, %s1956_s27 }
  0xaa   :  { %v1547_v25 = vpack.c.bf16 %v320_v24, %v318_v23  ;;  %v322_v28 = vld [vmem:[#allocation11 + $0x40] sm:$0xff]  ;;  %v1549_v29 = vpack.c.bf16 %v325_v27, %v323_v26  ;;  %v324_v30 = vld [vmem:[#allocation11 + $0x50] sm:$0xff]  ;;  %v327_v31 = vld [vmem:[#allocation11 + $0x68] sm:$0xff] }
  0xab   :  { %1526 = vmatmul.mubr.msk.f32.vlgmr.msra.gmra.mrb[0].mxu0 %vm156_vm1, %v146_v5  ;;  %v329_v32 = vld [vmem:[#allocation11 + $0x78] sm:$0xff]  ;;  %v1551_v33 = vpack.c.bf16 %v324_v30, %v322_v28  ;;  %v326_v35 = vld [vmem:[#allocation11 + $0x60] sm:$0xff]  ;;  %v328_v36 = vld [vmem:[#allocation11 + $0x70] sm:$0xff]  ;;  %p1963_p5 = por %p1962_p4, %p1961_p3 }
  0xac   :  { %1532 = vmatprep.mubr.msk.f32.mxu0 %vm2006_vm0, %v2007_v1  ;;  %1540 = vmatpush3.bf16.msra.mxu0 %v1539_v8  ;;  %v1553_v34 = vpack.c.bf16 %v329_v32, %v327_v31  ;;  %v1555_v37 = vpack.c.bf16 %v328_v36, %v326_v35  ;;  %v1576_v38 = vld [vmem:[#allocation14 + $0x4] ss:$28 sps:$4 sm:$0xff]   ;;  %v1580_v39 = vld [vmem:[#allocation14 + $0xc] ss:$28 sps:$4 sm:$0xff]   ;;  %v1582_v41 = vld [vmem:[#allocation14 + $0x3c] ss:$28 sps:$4 sm:$0xff]  }
  0xad   :  { %1542 = vmatprep.subr.bf16.mxu0 %v1541_v11  ;;  %v1581_v40 = vld [vmem:[#allocation14] ss:$28 sps:$4 sm:$0xff]   ;;  %1166 = vmatprep.subr.bf16.mxu1 %v1576_v38  ;;  %v1587_v42 = vld [vmem:[#allocation14 + $0x38] ss:$28 sps:$4 sm:$0xff]   ;;  %v1593_v44 = vld [vmem:[#allocation14 + $0x70] ss:$28 sps:$4 sm:$0xff]   ;;  %p1964_p6 = pnand %p1963_p5, %p1957_p2 }
  0xae   :  { %1167 = vmatpush1.bf16.msra.mxu1 %v1581_v40  ;;  %v1588_v43 = vld [vmem:[#allocation14 + $0x74] ss:$28 sps:$4 sm:$0xff]   ;;  %v1594_v45 = vld [vmem:[#allocation14 + $0xac] ss:$28 sps:$4 sm:$0xff]   ;;  %v1600_v47 = vld [vmem:[#allocation14 + $0xe4] ss:$28 sps:$4 sm:$0xff]  }
  0xaf   :  { %1168 = vmatprep.subr.bf16.mxu1 %v1582_v41  ;;  %v1599_v46 = vld [vmem:[#allocation14 + $0xa8] ss:$28 sps:$4 sm:$0xff]   ;;  %v1605_v48 = vld [vmem:[#allocation14 + $0xe0] ss:$28 sps:$4 sm:$0xff]   ;;  %v1611_v50 = vld [vmem:[#allocation14 + $0x118] ss:$28 sps:$4 sm:$0xff]  }
  0xb0   :  { %v1606_v49 = vld [vmem:[#allocation14 + $0x11c] ss:$28 sps:$4 sm:$0xff]   ;;  %v1612_v51 = vld [vmem:[#allocation14 + $0x154] ss:$28 sps:$4 sm:$0xff]   ;;  %v1618_v53 = vld [vmem:[#allocation14 + $0x18c] ss:$28 sps:$4 sm:$0xff]  }
  0xb1   :  { %v1617_v52 = vld [vmem:[#allocation14 + $0x150] ss:$28 sps:$4 sm:$0xff]   ;;  %v1623_v54 = vld [vmem:[#allocation14 + $0x188] ss:$28 sps:$4 sm:$0xff]   ;;  %v1629_v56 = vld [vmem:[#allocation14 + $0x1c0] ss:$28 sps:$4 sm:$0xff]  }
  0xb2   :  { %1169 = vmatpush1.bf16.msra.mxu1 %v1587_v42  ;;  %v1624_v55 = vld [vmem:[#allocation14 + $0x1c4] ss:$28 sps:$4 sm:$0xff]   ;;  %v1630_v57 = vld [vmem:[#allocation14 + $0x1fc] ss:$28 sps:$4 sm:$0xff]   ;;  %v1636_v59 = vld [vmem:[#allocation14 + $0x234] ss:$28 sps:$4 sm:$0xff]  }
  0xb3   :  { %1170 = vmatprep.subr.bf16.mxu1 %v1588_v43  ;;  %v1635_v58 = vld [vmem:[#allocation14 + $0x1f8] ss:$28 sps:$4 sm:$0xff]   ;;  %v1641_v60 = vld [vmem:[#allocation14 + $0x230] ss:$28 sps:$4 sm:$0xff]   ;;  %v1378_v61 = vld [vmem:[#allocation10] ss:$0 sm:$0xff] }
  0xb4   :  { %v1586_v2 = vld [vmem:[#allocation14 + $0x44] ss:$28 sps:$4 sm:$0xff]   ;;  %v1592_v5 = vld [vmem:[#allocation14 + $0x7c] ss:$28 sps:$4 sm:$0xff]   ;;  %v1598_v7 = vld [vmem:[#allocation14 + $0xb4] ss:$28 sps:$4 sm:$0xff]  }
  0xb5   :  { %v1584_v4 = vld [vmem:[#allocation14 + $0x40] ss:$28 sps:$4 sm:$0xff]   ;;  %v1590_v6 = vld [vmem:[#allocation14 + $0x78] ss:$28 sps:$4 sm:$0xff]   ;;  %v1596_v8 = vld [vmem:[#allocation14 + $0xb0] ss:$28 sps:$4 sm:$0xff]  }
  0xb6   :  { %1171 = vmatpush1.bf16.msra.mxu1 %v1593_v44  ;;  %v1604_v9 = vld [vmem:[#allocation14 + $0xec] ss:$28 sps:$4 sm:$0xff]   ;;  %v1610_v11 = vld [vmem:[#allocation14 + $0x124] ss:$28 sps:$4 sm:$0xff]   ;;  %v1640_v21 = vld [vmem:[#allocation14 + $0x23c] ss:$28 sps:$4 sm:$0xff]  }
  0xb7   :  { %1172 = vmatprep.subr.bf16.mxu1 %v1594_v45  ;;  %v1602_v10 = vld [vmem:[#allocation14 + $0xe8] ss:$28 sps:$4 sm:$0xff]   ;;  %v1620_v16 = vld [vmem:[#allocation14 + $0x190] ss:$28 sps:$4 sm:$0xff]   ;;  %v1632_v20 = vld [vmem:[#allocation14 + $0x200] ss:$28 sps:$4 sm:$0xff]   ;;  %v332_v45 = vlaneseq }
  0xb8   :  { %v1628_v17 = vld [vmem:[#allocation14 + $0x1cc] ss:$28 sps:$4 sm:$0xff]   ;;  %v1646_v24 = vld [vmem:[#allocation14 + $0x274] ss:$28 sps:$4 sm:$0xff]   ;;  %v1648_v27 = vld [vmem:[#allocation14 + $0x2a4] ss:$28 sps:$4 sm:$0xff]  }
  0xb9   :  { %v1642_v23 = vld [vmem:[#allocation14 + $0x26c] ss:$28 sps:$4 sm:$0xff]   ;;  %v1653_v30 = vld [vmem:[#allocation14 + $0x2a0] ss:$28 sps:$4 sm:$0xff]   ;;  %v1660_v35 = vld [vmem:[#allocation14 + $0x314] ss:$28 sps:$4 sm:$0xff]  }
  0xba   :  { %1173 = vmatpush1.bf16.msra.mxu1 %v1599_v46  ;;  %v1647_v26 = vld [vmem:[#allocation14 + $0x268] ss:$28 sps:$4 sm:$0xff]   ;;  %v1654_v31 = vld [vmem:[#allocation14 + $0x2dc] ss:$28 sps:$4 sm:$0xff]   ;;  %v1665_v38 = vld [vmem:[#allocation14 + $0x310] ss:$28 sps:$4 sm:$0xff]  }
  0xbb   :  { %1174 = vmatprep.subr.bf16.mxu1 %v1600_v47  ;;  %v1652_v28 = vld [vmem:[#allocation14 + $0x2ac] ss:$28 sps:$4 sm:$0xff]   ;;  %v1658_v32 = vld [vmem:[#allocation14 + $0x2e4] ss:$28 sps:$4 sm:$0xff]   ;;  %v1664_v36 = vld [vmem:[#allocation14 + $0x31c] ss:$28 sps:$4 sm:$0xff]  }
  0xbc   :  { %v1670_v40 = vld [vmem:[#allocation14 + $0x354] ss:$28 sps:$4 sm:$0xff]   ;;  %v1671_v42 = vld [vmem:[#allocation14 + $0x348] ss:$28 sps:$4 sm:$0xff]   ;;  %v2169_v46 = vshrl.u32 %v332_v45, 7 }
  0xbd   :  { %v1668_v41 = vld [vmem:[#allocation14 + $0x350] ss:$28 sps:$4 sm:$0xff]   ;;  %v1675_v44 = vld [vmem:[#allocation14 + $0x1d8] ss:$28 sps:$4 sm:$0xff]  }
  0xbe   :  { %1175 = vmatpush1.bf16.msra.mxu1 %v1605_v48  ;;  %v1674_v43 = vld [vmem:[#allocation14 + $0x14] ss:$28 sps:$4 sm:$0xff]   ;;  %v334_v47 = vsub.s32 0, %v2169_v46  ;;  %v330_v48 = vld [vmem:[#allocation13] sm:$0x3] }
  0xbf   :  { %1176 = vmatprep.subr.bf16.mxu1 %v1606_v49  ;;  %v338_v49 = vsub.s32 1, %v2169_v46  ;;  %v1733_v45 = vld [vmem:[#allocation14 + $0x358] ss:$28 sps:$4 sm:$0xff]  }
  0xc2   :  { %1177 = vmatpush1.bf16.msra.mxu1 %v1611_v50  ;;  %v335_v50 = vrot.slane %v330_v48, %v334_v47 }
  0xc3   :  { %1178 = vmatprep.subr.bf16.mxu1 %v1612_v51  ;;  %v339_v51 = vrot.slane %v330_v48, %v338_v49  ;;  %v565_v48 = vsub.s32 2, %v2169_v46 }
  0xc6   :  { %1179 = vmatpush1.bf16.msra.mxu1 %v1617_v52 }
  0xc7   :  { %1180 = vmatprep.subr.bf16.mxu1 %v1618_v53 }
  0xca   :  { %1181 = vmatpush1.bf16.msra.mxu1 %v1623_v54 }
  0xcb   :  { %1182 = vmatprep.subr.bf16.mxu1 %v1624_v55 }
  0xce   :  { %1183 = vmatpush1.bf16.msra.mxu1 %v1629_v56 }
  0xcf   :  { %1184 = vmatprep.subr.bf16.mxu1 %v1630_v57 }
  0xd2   :  { %1185 = vmatpush1.bf16.msra.mxu1 %v1635_v58 }
  0xd3   :  { %1186 = vmatprep.subr.bf16.mxu1 %v1636_v59 }
  0xd6   :  { %1187 = vmatpush1.bf16.msra.mxu1 %v1641_v60 }
  0xd7   :  { %1188 = vmatprep.subr.bf16.mxu1 %v1642_v23  ;;  %v1705_v23 = vld [vmem:[#allocation14 + $0x328] ss:$28 sps:$4 sm:$0xff]  }
  0xda   :  { %1189 = vmatpush1.bf16.msra.mxu1 %v1647_v26  ;;  %v1709_v26 = vld [vmem:[#allocation14 + $0x19c] ss:$28 sps:$4 sm:$0xff]  }
  0xdb   :  { %1190 = vmatprep.subr.bf16.mxu1 %v1648_v27  ;;  %v1710_v27 = vld [vmem:[#allocation14 + $0x360] ss:$28 sps:$4 sm:$0xff]  }
  0xde   :  { %1191 = vmatpush1.bf16.msra.mxu1 %v1653_v30  ;;  %v1714_v30 = vld [vmem:[#allocation14 + $0x1d4] ss:$28 sps:$4 sm:$0xff]  }
  0xdf   :  { %1192 = vmatprep.subr.bf16.mxu1 %v1654_v31  ;;  %v1712_v31 = vld [vmem:[#allocation14 + $0x1d0] ss:$28 sps:$4 sm:$0xff]  }
 0x17e   :  { %v226_v13 = vpop.f32.mrb[0].mxu0 }
 0x17f   :  { %v227_v14 = vadd.f32 %v1376_v12, %v226_v13  ;;  %v1527_v15 = vpop.f32.mrb[1].mxu0  ;;  %v1608_v12 = vld [vmem:[#allocation14 + $0x120] ss:$28 sps:$4 sm:$0xff]  }
 0x180   :  { %v1616_v13 = vld [vmem:[#allocation14 + $0x15c] ss:$28 sps:$4 sm:$0xff]   ;;  %v1622_v15 = vld [vmem:[#allocation14 + $0x194] ss:$28 sps:$4 sm:$0xff]  }
 0x181   :  { %1736 = vtanh.f32 %v227_v14  ;;  %v1614_v14 = vld [vmem:[#allocation14 + $0x158] ss:$28 sps:$4 sm:$0xff]  }
 0x18b   :  { %v1737_v19 = vpop.eup %1736 }
 0x18c   :  { %1533 = vmatmul.mubr.msk.f32.vlgmr.msra.gmra.mrb[2].mxu0 %vm156_vm1, %v1737_v19  ;;  %v1634_v19 = vld [vmem:[#allocation14 + $0x204] ss:$28 sps:$4 sm:$0xff]  }
 0x18d   :  { %1544 = vmatpush1.bf16.msra.mxu0 %v1543_v18  ;;  %410 = vmatprep.mubr.f32.mxu0 %v2007_v1  ;;  %v1578_v1 = vld [vmem:[#allocation14 + $0x8] ss:$28 sps:$4 sm:$0xff]  }
 0x18e   :  { %1546 = vmatprep.subr.bf16.mxu0 %v1545_v22  ;;  %v1626_v18 = vld [vmem:[#allocation14 + $0x1c8] ss:$28 sps:$4 sm:$0xff]   ;;  %v1638_v22 = vld [vmem:[#allocation14 + $0x238] ss:$28 sps:$4 sm:$0xff]  }
 0x191   :  { %1548 = vmatpush1.bf16.msra.mxu0 %v1547_v25  ;;  %v1644_v25 = vld [vmem:[#allocation14 + $0x270] ss:$28 sps:$4 sm:$0xff]  }
 0x192   :  { %1550 = vmatprep.subr.bf16.mxu0 %v1549_v29  ;;  %v1650_v29 = vld [vmem:[#allocation14 + $0x2a8] ss:$28 sps:$4 sm:$0xff]  }
 0x195   :  { %1552 = vmatpush1.bf16.msra.mxu0 %v1551_v33  ;;  %v1656_v33 = vld [vmem:[#allocation14 + $0x2e0] ss:$28 sps:$4 sm:$0xff]  }
 0x196   :  { %1554 = vmatprep.subr.bf16.mxu0 %v1553_v34  ;;  %v1659_v34 = vld [vmem:[#allocation14 + $0x2d8] ss:$28 sps:$4 sm:$0xff]  }
 0x197   :  { %1193 = vmatpush1.bf16.msra.mxu1 %v1659_v34  ;;  %v1720_v34 = vld [vmem:[#allocation14 + $0x244] ss:$28 sps:$4 sm:$0xff]  }
 0x198   :  { %1194 = vmatprep.subr.bf16.mxu1 %v1660_v35  ;;  %v1718_v35 = vld [vmem:[#allocation14 + $0x240] ss:$28 sps:$4 sm:$0xff]  }
 0x199   :  { %1556 = vmatpush1.bf16.msra.mxu0 %v1555_v37  ;;  %v1662_v37 = vld [vmem:[#allocation14 + $0x318] ss:$28 sps:$4 sm:$0xff]  }
 0x19a   :  { %1207 = vmatprep.subr.bf16.mxu0 %v1580_v39  ;;  %v1666_v39 = vld [vmem:[#allocation14 + $0x34c] ss:$28 sps:$4 sm:$0xff]  }
 0x19b   :  { %1195 = vmatpush1.bf16.msra.mxu1 %v1665_v38  ;;  %v1726_v38 = vld [vmem:[#allocation14 + $0x2b4] ss:$28 sps:$4 sm:$0xff]  }
 0x19c   :  { %1196 = vmatprep.subr.bf16.mxu1 %v1666_v39  ;;  %v1724_v39 = vld [vmem:[#allocation14 + $0x2b0] ss:$28 sps:$4 sm:$0xff]  }
 0x19f   :  { %1197 = vmatpush1.bf16.msra.mxu1 %v1671_v42  ;;  %v1732_v42 = vld [vmem:[#allocation14 + $0x324] ss:$28 sps:$4 sm:$0xff]  }
 0x1a0   :  { %1248 = vmatprep.subr.bf16.mxu1 %v1674_v43  ;;  %v1730_v43 = vld [vmem:[#allocation14 + $0x320] ss:$28 sps:$4 sm:$0xff]  }
 0x25f   :  { %v309_v62 = vpop.f32.mrb[2].mxu0 }
 0x260   :  { %v310_v63 = vadd.f32 %v1378_v61, %v309_v62  ;;  %v1534_v0 = vpop.f32.mrb[3].mxu0 }
 0x261   :  { %v1676_v0 = vld [vmem:[#allocation14 + $0x18] ss:$28 sps:$4 sm:$0xff]  }
 0x262   :  { %1738 = vtanh.f32 %v310_v63  ;;  %v1672_v63 = vld [vmem:[#allocation14 + $0x10] ss:$28 sps:$4 sm:$0xff]  }
 0x26c   :  { %v1739_v3 = vpop.eup %1738 }
 0x26d   :  { %1380 = vmatmul.mubr.msk.f32.vlgmr.msra.gmra.mrb[4].mxu0 %vm342_vm2, %v1739_v3  ;;  %v1680_v3 = vld [vmem:[#allocation14 + $0x210] ss:$28 sps:$4 sm:$0xff]  }
 0x26e   :  { %1208 = vmatpush1.bf16.msra.mxu0 %v1578_v1 }
 0x26f   :  { %1209 = vmatprep.subr.bf16.mxu0 %v1586_v2  ;;  %v1679_v2 = vld [vmem:[#allocation14 + $0x4c] ss:$28 sps:$4 sm:$0xff]  }
 0x272   :  { %1210 = vmatpush1.bf16.msra.mxu0 %v1584_v4  ;;  %v1677_v4 = vld [vmem:[#allocation14 + $0x48] ss:$28 sps:$4 sm:$0xff]  }
 0x273   :  { %1211 = vmatprep.subr.bf16.mxu0 %v1592_v5  ;;  %v1681_v5 = vld [vmem:[#allocation14 + $0x50] ss:$28 sps:$4 sm:$0xff]  }
 0x276   :  { %1212 = vmatpush1.bf16.msra.mxu0 %v1590_v6  ;;  %v1684_v6 = vld [vmem:[#allocation14 + $0x84] ss:$28 sps:$4 sm:$0xff]  }
 0x277   :  { %1213 = vmatprep.subr.bf16.mxu0 %v1598_v7  ;;  %v1685_v7 = vld [vmem:[#allocation14 + $0x248] ss:$28 sps:$4 sm:$0xff]  }
 0x27a   :  { %1214 = vmatpush1.bf16.msra.mxu0 %v1596_v8  ;;  %v1682_v8 = vld [vmem:[#allocation14 + $0x80] ss:$28 sps:$4 sm:$0xff]  }
 0x27b   :  { %1215 = vmatprep.subr.bf16.mxu0 %v1604_v9  ;;  %v1686_v9 = vld [vmem:[#allocation14 + $0x88] ss:$28 sps:$4 sm:$0xff]  }
 0x27e   :  { %1216 = vmatpush1.bf16.msra.mxu0 %v1602_v10  ;;  %v1689_v10 = vld [vmem:[#allocation14 + $0xbc] ss:$28 sps:$4 sm:$0xff]  }
 0x27f   :  { %1217 = vmatprep.subr.bf16.mxu0 %v1610_v11  ;;  %v1690_v11 = vld [vmem:[#allocation14 + $0x280] ss:$28 sps:$4 sm:$0xff]  }
 0x282   :  { %1218 = vmatpush1.bf16.msra.mxu0 %v1608_v12  ;;  %v1687_v12 = vld [vmem:[#allocation14 + $0xb8] ss:$28 sps:$4 sm:$0xff]  }
 0x283   :  { %1219 = vmatprep.subr.bf16.mxu0 %v1616_v13  ;;  %v1691_v13 = vld [vmem:[#allocation14 + $0xc0] ss:$28 sps:$4 sm:$0xff]  }
 0x286   :  { %1220 = vmatpush1.bf16.msra.mxu0 %v1614_v14  ;;  %v1694_v14 = vld [vmem:[#allocation14 + $0xf4] ss:$28 sps:$4 sm:$0xff]  }
 0x287   :  { %1221 = vmatprep.subr.bf16.mxu0 %v1622_v15  ;;  %v1695_v15 = vld [vmem:[#allocation14 + $0x2b8] ss:$28 sps:$4 sm:$0xff]  }
 0x28a   :  { %1222 = vmatpush1.bf16.msra.mxu0 %v1620_v16  ;;  %v1692_v16 = vld [vmem:[#allocation14 + $0xf0] ss:$28 sps:$4 sm:$0xff]  }
 0x28b   :  { %1223 = vmatprep.subr.bf16.mxu0 %v1628_v17  ;;  %v1696_v17 = vld [vmem:[#allocation14 + $0xf8] ss:$28 sps:$4 sm:$0xff]  }
 0x28e   :  { %1224 = vmatpush1.bf16.msra.mxu0 %v1626_v18  ;;  %v1699_v18 = vld [vmem:[#allocation14 + $0x12c] ss:$28 sps:$4 sm:$0xff]  }
 0x28f   :  { %1225 = vmatprep.subr.bf16.mxu0 %v1634_v19  ;;  %v1700_v19 = vld [vmem:[#allocation14 + $0x2f0] ss:$28 sps:$4 sm:$0xff]  }
 0x292   :  { %1226 = vmatpush1.bf16.msra.mxu0 %v1632_v20  ;;  %v1697_v20 = vld [vmem:[#allocation14 + $0x128] ss:$28 sps:$4 sm:$0xff]  }
 0x293   :  { %1227 = vmatprep.subr.bf16.mxu0 %v1640_v21  ;;  %v1701_v21 = vld [vmem:[#allocation14 + $0x130] ss:$28 sps:$4 sm:$0xff]  }
 0x296   :  { %1228 = vmatpush1.bf16.msra.mxu0 %v1638_v22  ;;  %v1704_v22 = vld [vmem:[#allocation14 + $0x164] ss:$28 sps:$4 sm:$0xff]  }
 0x297   :  { %1229 = vmatprep.subr.bf16.mxu0 %v1646_v24  ;;  %v1702_v24 = vld [vmem:[#allocation14 + $0x160] ss:$28 sps:$4 sm:$0xff]  }
 0x29a   :  { %1230 = vmatpush1.bf16.msra.mxu0 %v1644_v25  ;;  %v1706_v25 = vld [vmem:[#allocation14 + $0x168] ss:$28 sps:$4 sm:$0xff]  }
 0x29b   :  { %1231 = vmatprep.subr.bf16.mxu0 %v1652_v28  ;;  %v1707_v28 = vld [vmem:[#allocation14 + $0x198] ss:$28 sps:$4 sm:$0xff]  }
 0x29e   :  { %1232 = vmatpush1.bf16.msra.mxu0 %v1650_v29  ;;  %v1711_v29 = vld [vmem:[#allocation14 + $0x1a0] ss:$28 sps:$4 sm:$0xff]  }
 0x29f   :  { %1233 = vmatprep.subr.bf16.mxu0 %v1658_v32  ;;  %v1717_v32 = vld [vmem:[#allocation14 + $0x20c] ss:$28 sps:$4 sm:$0xff]  }
 0x2a2   :  { %1234 = vmatpush1.bf16.msra.mxu0 %v1656_v33  ;;  %v1715_v33 = vld [vmem:[#allocation14 + $0x208] ss:$28 sps:$4 sm:$0xff]  }
 0x2a3   :  { %1235 = vmatprep.subr.bf16.mxu0 %v1664_v36  ;;  %v1723_v36 = vld [vmem:[#allocation14 + $0x27c] ss:$28 sps:$4 sm:$0xff]  }
 0x2a6   :  { %1236 = vmatpush1.bf16.msra.mxu0 %v1662_v37  ;;  %v1721_v37 = vld [vmem:[#allocation14 + $0x278] ss:$28 sps:$4 sm:$0xff]  }
 0x2a7   :  { %1237 = vmatprep.subr.bf16.mxu0 %v1670_v40  ;;  %v1729_v40 = vld [vmem:[#allocation14 + $0x2ec] ss:$28 sps:$4 sm:$0xff]  }
 0x2aa   :  { %1238 = vmatpush1.bf16.msra.mxu0 %v1668_v41  ;;  %v1727_v41 = vld [vmem:[#allocation14 + $0x2e8] ss:$28 sps:$4 sm:$0xff]  }
 0x2ab   :  { %1499 = vmatprep.subr.bf16.mxu0 %v1675_v44  ;;  %v1735_v44 = vld [vmem:[#allocation14 + $0x35c] ss:$28 sps:$4 sm:$0xff]  }
 0x340   :  { %v412_v52 = vpop.f32.mrb[4].mxu0 }
 0x341   :  { %v413_v53 = vadd.f32 %v412_v52, %v335_v50  ;;  %v414_v54 = vpop.f32.mrb[5].mxu0  ;;  %v553_v50 = vld [vmem:[#allocation16] sm:$0xff] }
 0x342   :  { %v415_v55 = vadd.f32 %v414_v54, %v339_v51  ;;  %v569_v51 = vsub.s32 3, %v2169_v46  ;;  %v558_v52 = vrot.slane %v553_v50, %v334_v47  ;;  %v562_v54 = vrot.slane %v553_v50, %v338_v49 }
 0x343   :  { %1740 = vtanh.f32 %v413_v53  ;;  %v566_v53 = vrot.slane %v553_v50, %v565_v48 }
 0x344   :  { %1742 = vtanh.f32 %v415_v55  ;;  %v570_v55 = vrot.slane %v553_v50, %v569_v51 }
 0x34d   :  { %v1741_v56 = vpop.eup %1740 }
 0x34e   :  { %v1743_v57 = vpop.eup %1742  ;;  %v419_v58 = vmul.f32 0.5, %v1741_v56 }
 0x34f   :  { %v420_v59 = vmul.f32 0.5, %v1743_v57 }
 0x350   :  { %v421_v60 = vadd.f32 0.5, %v419_v58 }
 0x351   :  { %v422_v61 = vadd.f32 0.5, %v420_v59 }
 0x352   :  { %v2177_v1 = vpack.c.bf16 %v421_v60, %v421_v60 }
 0x353   :  { %v424_v62 = vpack.c.bf16 %v422_v61, %v422_v61 }
 0x355   :  { %1198 = vmatprep.mubr.bf16.mxu1 %v424_v62  ;;  %1239 = vmatprep.mubr.bf16.mxu0 %v424_v62 }
 0x356   :  { %1199 = vmatmul.mubr.bf16.vlgmr.msra.gmra.mrb[0].mxu1 %v2177_v1  ;;  %1240 = vmatmul.mubr.bf16.vlgmr.msra.gmra.mrb[8].mxu0 %v2177_v1 }
 0x357   :  { %1249 = vmatpush1.bf16.msra.mxu1 %v1672_v63  ;;  %1500 = vmatpush3.bf16.msra.mxu0 %v1676_v0 }
 0x358   :  { %1280 = vmatprep.mubr.bf16.mxu1 %v424_v62  ;;  %1321 = vmatprep.mubr.bf16.mxu0 %v424_v62 }
 0x359   :  { %1250 = vmatprep.subr.bf16.mxu1 %v1679_v2  ;;  %1501 = vmatprep.subr.bf16.mxu0 %v1680_v3 }
 0x35b   :  { %1251 = vmatpush1.bf16.msra.mxu1 %v1677_v4  ;;  %1502 = vmatpush3.bf16.msra.mxu0 %v1681_v5 }
 0x35c   :  { %1252 = vmatprep.subr.bf16.mxu1 %v1684_v6  ;;  %1503 = vmatprep.subr.bf16.mxu0 %v1685_v7 }
 0x35f   :  { %1253 = vmatpush1.bf16.msra.mxu1 %v1682_v8  ;;  %1504 = vmatpush3.bf16.msra.mxu0 %v1686_v9 }
 0x360   :  { %1254 = vmatprep.subr.bf16.mxu1 %v1689_v10  ;;  %1505 = vmatprep.subr.bf16.mxu0 %v1690_v11 }
 0x363   :  { %1255 = vmatpush1.bf16.msra.mxu1 %v1687_v12  ;;  %1506 = vmatpush3.bf16.msra.mxu0 %v1691_v13 }
 0x364   :  { %1256 = vmatprep.subr.bf16.mxu1 %v1694_v14  ;;  %1507 = vmatprep.subr.bf16.mxu0 %v1695_v15  ;;  %v581_v14 = vsub.s32 6, %v2169_v46 }
 0x367   :  { %1257 = vmatpush1.bf16.msra.mxu1 %v1692_v16  ;;  %1508 = vmatpush3.bf16.msra.mxu0 %v1696_v17  ;;  %v582_v16 = vrot.slane %v553_v50, %v581_v14 }
 0x368   :  { %1258 = vmatprep.subr.bf16.mxu1 %v1699_v18  ;;  %1509 = vmatprep.subr.bf16.mxu0 %v1700_v19 }
 0x36b   :  { %1259 = vmatpush1.bf16.msra.mxu1 %v1697_v20  ;;  %1510 = vmatpush3.bf16.msra.mxu0 %v1701_v21 }
 0x36c   :  { %1260 = vmatprep.subr.bf16.mxu1 %v1704_v22  ;;  %1511 = vmatprep.subr.bf16.mxu0 %v1705_v23 }
 0x36f   :  { %1261 = vmatpush1.bf16.msra.mxu1 %v1702_v24  ;;  %1512 = vmatpush3.bf16.msra.mxu0 %v1706_v25  ;;  %v573_v25 = vsub.s32 4, %v2169_v46 }
 0x370   :  { %1262 = vmatprep.subr.bf16.mxu1 %v1709_v26  ;;  %1513 = vmatprep.subr.bf16.mxu0 %v1710_v27  ;;  %v577_v26 = vsub.s32 5, %v2169_v46 }
 0x371   :  { %v574_v27 = vrot.slane %v553_v50, %v573_v25 }
 0x373   :  { %1263 = vmatpush1.bf16.msra.mxu1 %v1707_v28  ;;  %1514 = vmatpush3.bf16.msra.mxu0 %v1711_v29  ;;  %v578_v28 = vrot.slane %v553_v50, %v577_v26 }
 0x374   :  { %1264 = vmatprep.subr.bf16.mxu1 %v1714_v30 }
 0x376   :  { %1322 = vmatmul.mubr.bf16.vlgmr.msra.gmra.mrb[12].mxu0 %v2177_v1 }
 0x377   :  { %1265 = vmatpush1.bf16.msra.mxu1 %v1712_v31 }
 0x378   :  { %1266 = vmatprep.subr.bf16.mxu1 %v1717_v32 }
 0x37b   :  { %1267 = vmatpush1.bf16.msra.mxu1 %v1715_v33 }
 0x37c   :  { %1268 = vmatprep.subr.bf16.mxu1 %v1720_v34 }
 0x37f   :  { %1269 = vmatpush1.bf16.msra.mxu1 %v1718_v35 }
 0x380   :  { %1270 = vmatprep.subr.bf16.mxu1 %v1723_v36 }
 0x383   :  { %1271 = vmatpush1.bf16.msra.mxu1 %v1721_v37 }
 0x384   :  { %1272 = vmatprep.subr.bf16.mxu1 %v1726_v38 }
 0x387   :  { %1273 = vmatpush1.bf16.msra.mxu1 %v1724_v39 }
 0x388   :  { %1274 = vmatprep.subr.bf16.mxu1 %v1729_v40 }
 0x38b   :  { %1275 = vmatpush1.bf16.msra.mxu1 %v1727_v41 }
 0x38c   :  { %1276 = vmatprep.subr.bf16.mxu1 %v1732_v42 }
 0x38f   :  { %1277 = vmatpush1.bf16.msra.mxu1 %v1730_v43 }
 0x390   :  { %1278 = vmatprep.subr.bf16.mxu1 %v1735_v44 }
 0x393   :  { %1279 = vmatpush1.bf16.msra.mxu1 %v1733_v45 }
 0x396   :  { %1281 = vmatmul.mubr.bf16.vlgmr.msra.gmra.mrb[4].mxu1 %v2177_v1 }
 0x429   :  { %v1200_v56 = vpop.f32.mrb[0].mxu1  ;;  %v1241_v57 = vpop.f32.mrb[8].mxu0 }
 0x42a   :  { %v1201_v58 = vadd.f32 %v1200_v56, %v558_v52  ;;  %v1242_v59 = vadd.f32 %v1241_v57, %v566_v53  ;;  %v1202_v60 = vpop.f32.mrb[1].mxu1  ;;  %v1243_v61 = vpop.f32.mrb[9].mxu0 }
 0x42b   :  { %v1203_v62 = vadd.f32 %v1202_v60, %v562_v54  ;;  %v1244_v63 = vadd.f32 %v1243_v61, %v570_v55  ;;  %v1204_v0 = vpop.f32.mrb[2].mxu1  ;;  %v1245_v1 = vpop.f32.mrb[10].mxu0 }
 0x42c   :  { %1744 = vtanh.f32 %v1201_v58  ;;  %v1205_v2 = vpop.f32.mrb[3].mxu1  ;;  %v1246_v3 = vpop.f32.mrb[11].mxu0 }
 0x42d   :  { %1746 = vtanh.f32 %v1242_v59 }
 0x42e   :  { %1748 = vtanh.f32 %v1203_v62 }
 0x42f   :  { %1750 = vtanh.f32 %v1244_v63 }
 0x436   :  { %v1745_v47 = vpop.eup %1744 }
 0x437   :  { %v1747_v4 = vpop.eup %1746  ;;  %v1336_v49 = vmul.f32 0.5, %v1745_v47 }
 0x438   :  { %v1749_v5 = vpop.eup %1748  ;;  %v1338_v6 = vmul.f32 0.5, %v1747_v4 }
 0x439   :  { %v1751_v7 = vpop.eup %1750  ;;  %v1343_v8 = vadd.f32 0.5, %v1336_v49  ;;  %v1337_v9 = vmul.f32 0.5, %v1749_v5 }
 0x43a   :  { %v1345_v10 = vadd.f32 0.5, %v1338_v6  ;;  %v1339_v11 = vmul.f32 0.5, %v1751_v7 }
 0x43b   :  { %1350 = vst [vmem:[#allocation17] sm:$0xff] %v1343_v8  ;;  %v1344_v12 = vadd.f32 0.5, %v1337_v9 }
 0x43c   :  { %1352 = vst [vmem:[#allocation17 + $0x10] sm:$0xff] %v1345_v10  ;;  %v1346_v13 = vadd.f32 0.5, %v1339_v11 }
 0x43d   :  { %1351 = vst [vmem:[#allocation17 + $0x8] sm:$0xff] %v1344_v12 }
 0x43e   :  { %1353 = vst [vmem:[#allocation17 + $0x18] sm:$0xff] %v1346_v13 }
 0x449   :  { %v1515_v15 = vpop.f32.mrb[12].mxu0 }
 0x44a   :  { %v1516_v17 = vpop.f32.mrb[13].mxu0 }
 0x44b   :  { %v1517_v18 = vadd.f32 %v1516_v17, %v1515_v15  ;;  %v1518_v19 = vpop.f32.mrb[14].mxu0 }
 0x44c   :  { %v1519_v20 = vpop.f32.mrb[15].mxu0 }
 0x44d   :  { %v1324_v21 = vadd.f32 %v1517_v18, %v582_v16 }
 0x44f   :  { %1752 = vtanh.f32 %v1324_v21 }
 0x459   :  { %v1753_v22 = vpop.eup %1752 }
 0x45a   :  { %v1342_v23 = vmul.f32 0.5, %v1753_v22 }
 0x45c   :  { %v1349_v24 = vadd.f32 0.5, %v1342_v23 }
 0x45e   :  { %1356 = vst [vmem:[#allocation17 + $0x30] sm:$0xff] %v1349_v24 }
 0x469   :  { %v1282_v29 = vpop.f32.mrb[4].mxu1 }
 0x46a   :  { %v1283_v30 = vadd.f32 %v1282_v29, %v574_v27  ;;  %v1284_v31 = vpop.f32.mrb[5].mxu1 }
 0x46b   :  { %v1285_v32 = vadd.f32 %v1284_v31, %v578_v28  ;;  %v1286_v33 = vpop.f32.mrb[6].mxu1 }
 0x46c   :  { %1754 = vtanh.f32 %v1283_v30  ;;  %v1287_v34 = vpop.f32.mrb[7].mxu1 }
 0x46d   :  { %1756 = vtanh.f32 %v1285_v32 }
 0x476   :  { %v1755_v35 = vpop.eup %1754 }
 0x477   :  { %v1757_v36 = vpop.eup %1756  ;;  %v1340_v37 = vmul.f32 0.5, %v1755_v35 }
 0x478   :  { %v1341_v38 = vmul.f32 0.5, %v1757_v36 }
 0x479   :  { %v1347_v39 = vadd.f32 0.5, %v1340_v37 }
 0x47a   :  { %v1348_v40 = vadd.f32 0.5, %v1341_v38 }
 0x47b   :  { %1354 = vst [vmem:[#allocation17 + $0x20] sm:$0xff] %v1347_v39 }
 0x47c   :  { %1355 = vst [vmem:[#allocation17 + $0x28] sm:$0xff] %v1348_v40 }
 0x47d   :  { %1967 = shalt.err (!%p1964_p6)
}
 0x47e   :  { %s1968_s7 = scalar_lea.hbm %s2213_s9, 896 }
 0x47f   :  { %p1969_p7 = scmp.ne.s32.totalorder %s2213_s9, %s1968_s7  ;;  %p1972_p8 = scmp.lt.u32.totalorder %s1968_s7, %s2213_s9 }
 0x481   :  { %p1974_p9 = pnand %p1972_p8, %p1969_p7 }
 0x483   :  { %1977 = shalt.err (!%p1974_p9)
}
 0x484   :  { %1366 = dma.vmem_to_hbm [thread:$0]  %s1364_s24, 896, %s2213_s9, [#allocation4]  }
 0x485   :  { %1988 = dma.done.wait [#allocation4], 896  }
 0x486   :  { %1989 = vsyncadd [#allocation4], 4294966400 }
 0x487   :  { %1370 = vsyncpa [#allocation3], 1 }
 0x488   :  { %1371 = vsyncpa [#allocation6], 1 }
 0x489   :  { %1372 = vsyncpa [#allocation9], 1 }
 0x48a   :  { %1373 = vsyncpa [#allocation12], 1 }
 0x48b   :  { %1374 = vsyncpa [#allocation15], 1 }
 0x48c   :  { %1375 = vsyncpa [#allocation4], 1 }

</bundles_post_ra>
